<compile_context>
chip_gen: v6e
topology: v6e:2x2x1
jax: 0.10.0
libtpu: 0.0.40
codegen_flags: <defaults>
</compile_context>

<pallas_src>
import functools

import jax
import jax.numpy as jnp
from jax.experimental import pallas as pl
from jax.experimental.pallas import tpu as pltpu

_LANE = 128


# ---------------------------------------------------------------------------
# Pallas kernel: fused 2-layer MLP over one (C, tn) channel-major tile.
# ---------------------------------------------------------------------------
def refine_mlp_kernel(x_ref, w1t_ref, b1_ref, w2t_ref, b2_ref, o_ref):
    # x_ref:   (C, tn)    features tile (proposals on lanes, possibly masked last tile)
    # w1t_ref: (H, C)     first linear weight, transposed
    # b1_ref:  (H, 1)     first linear bias (broadcast over lanes)
    # w2t_ref: (OUT, H)   second linear weight, transposed (OUT = K*(DOF+1))
    # b2_ref:  (OUT, 1)   second linear bias
    # o_ref:   (OUT, tn)  raw MLP predictions, bf16 lane-dense store
    h = jnp.dot(w1t_ref[...], x_ref[...], preferred_element_type=jnp.float32)
    h = jnp.maximum(h + b1_ref[...], 0.0)                        # Linear + ReLU
    pred = jnp.dot(w2t_ref[...], h, preferred_element_type=jnp.float32)
    o_ref[...] = (pred + b2_ref[...]).astype(o_ref.dtype)        # Linear (no ReLU), bf16 store


def refinement_forward(features, proposal_boxes, params, *, num_classes, box_dof, tn=4096):
    """features: (B, C, N) (PyTorch NCW layout), proposal_boxes: (B, N, BOX_DOF) float32."""
    w1, b1, w2, b2 = params
    B, C, N = features.shape
    H = w1.shape[1]
    OUT = w2.shape[1]                       # == num_classes * (box_dof + 1)
    assert OUT == num_classes * (box_dof + 1)

    # Lane-tile selection: no padding / divisibility games, just cap at the smallest
    # 128-multiple covering N, then shrink (by halving, staying 128-aligned) until the
    # grid has >= 8 total steps (>= 2 per TC on a v7x megacore) or the tile hits 512
    # lanes (128 if N itself is tiny).
    tn_cap = pl.cdiv(N, _LANE) * _LANE
    tn_eff = max(_LANE, min(tn, tn_cap) // _LANE * _LANE)
    min_tile = _LANE if tn_cap < 512 else 512
    while B * pl.cdiv(N, tn_eff) < 8:
        nxt = (tn_eff // 2) // _LANE * _LANE
        if nxt < min_tile:
            break
        tn_eff = nxt

    w1t = w1.T                              # (H, C)
    w2t = w2.T                              # (OUT, H)
    b1c = b1.reshape(H, 1)
    b2c = b2.reshape(OUT, 1)

    out = pl.pallas_call(
        refine_mlp_kernel,
        out_shape=jax.ShapeDtypeStruct((B, OUT, N), jnp.bfloat16),
        grid_spec=pltpu.PrefetchScalarGridSpec(
            num_scalar_prefetch=0,
            grid=(B, pl.cdiv(N, tn_eff)),
            in_specs=[
                pl.BlockSpec((None, C, tn_eff), lambda b, j: (b, 0, j)),  # features tile
                pl.BlockSpec((H, C), lambda b, j: (0, 0)),                # w1ᵀ (resident)
                pl.BlockSpec((H, 1), lambda b, j: (0, 0)),                # b1
                pl.BlockSpec((OUT, H), lambda b, j: (0, 0)),              # w2ᵀ (resident)
                pl.BlockSpec((OUT, 1), lambda b, j: (0, 0)),              # b2
            ],
            out_specs=pl.BlockSpec((None, OUT, tn_eff), lambda b, j: (b, 0, j)),
        ),
        compiler_params=pltpu.CompilerParams(
            dimension_semantics=("parallel", "parallel"),
        ),
    )(features, w1t, b1c, w2t, b2c)

    # Glue: reorganize_predictions + apply_refinements.  The convert + transpose +
    # reshape + slice + broadcast-add fuse into a single elementwise pass in XLA.
    # TODO(synk): if downstream (inference(): softmax/topk/gather) accepted channel-major
    # (B, K*(DOF+1), N) slabs, this transpose pass could be skipped entirely.
    out = out[:, :, :N].astype(jnp.float32)                              # guard slice (no-op)
    out = jnp.transpose(out, (0, 2, 1)).reshape(B, N, num_classes, box_dof + 1)
    boxes = proposal_boxes[:, :, None, :] + out[..., :box_dof]           # residual decode
    scores = out[..., box_dof]                                           # raw class scores
    return boxes, scores


if __name__ == "__main__":
    # Synthetic config (small):
    #   REFINEMENT.MLPS = [32, 32], NUM_CLASSES = 4, BOX_DOF = 7
    #   -> MLP channels [32, 32, 4 * 8 = 32]
    # N_PROP deliberately NOT a multiple of 128 to exercise the masked partial tile.
    B, C_IN, N_PROP = 2, 32, 200
    HIDDEN = 32
    NUM_CLASSES, BOX_DOF = 4, 7
    OUT = NUM_CLASSES * (BOX_DOF + 1)

    key = jax.random.PRNGKey(0)
    kf, kp, k1, k2, k3, k4 = jax.random.split(key, 6)

    features = jax.random.normal(kf, (B, C_IN, N_PROP), dtype=jnp.float32)
    proposal_boxes = jax.random.normal(kp, (B, N_PROP, BOX_DOF), dtype=jnp.float32)

    # Deterministic synthetic MLP parameters (Linear layers: y = x @ W + b).
    w1 = 0.1 * jax.random.normal(k1, (C_IN, HIDDEN), dtype=jnp.float32)
    b1 = 0.1 * jax.random.normal(k2, (HIDDEN,), dtype=jnp.float32)
    w2 = 0.1 * jax.random.normal(k3, (HIDDEN, OUT), dtype=jnp.float32)
    b2 = 0.1 * jax.random.normal(k4, (OUT,), dtype=jnp.float32)
    params = (w1, b1, w2, b2)

    fwd = jax.jit(functools.partial(
        refinement_forward, num_classes=NUM_CLASSES, box_dof=BOX_DOF))
    boxes, scores = fwd(features, proposal_boxes, params)
    jax.block_until_ready((boxes, scores))

    # Pure-JAX reference check (routed through bf16 at the same point as the kernel).
    xr = jnp.transpose(features, (0, 2, 1)).reshape(B * N_PROP, C_IN)
    hr = jnp.maximum(xr @ w1 + b1, 0.0)
    pr = (hr @ w2 + b2).astype(jnp.bfloat16).astype(jnp.float32)
    pr = pr.reshape(B, N_PROP, NUM_CLASSES, BOX_DOF + 1)
    boxes_ref = proposal_boxes[:, :, None, :] + pr[..., :BOX_DOF]
    scores_ref = pr[..., BOX_DOF]

    assert boxes.shape == (B, N_PROP, NUM_CLASSES, BOX_DOF)
    assert scores.shape == (B, N_PROP, NUM_CLASSES)
    assert jnp.isfinite(boxes).all() and jnp.isfinite(scores).all()
    assert jnp.allclose(boxes, boxes_ref, atol=2e-2, rtol=2e-2)
    assert jnp.allclose(scores, scores_ref, atol=2e-2, rtol=2e-2)

    # TODO(synk): inference() (softmax + topk + gather) is not part of forward();
    # not implemented in the kernel.
    print("KERNEL_OK")
</pallas_src>

<mosaic_0001>
module attributes {stable_mosaic.version = 11 : i64} {
  func.func @refine_mlp_kernel(%arg0: i32, %arg1: i32, %arg2: memref<1x32x128xf32, #tpu.memory_space<vmem>>, %arg3: memref<32x32xf32, #tpu.memory_space<vmem>>, %arg4: memref<32x1xf32, #tpu.memory_space<vmem>>, %arg5: memref<32x32xf32, #tpu.memory_space<vmem>>, %arg6: memref<32x1xf32, #tpu.memory_space<vmem>>, %arg7: memref<1x32x128xbf16, #tpu.memory_space<vmem>>) attributes {dimension_semantics = [#tpu.dimension_semantics<parallel>, #tpu.dimension_semantics<parallel>], iteration_bounds = array<i64: 2, 2>, scalar_prefetch = 0 : i64, scratch_operands = 0 : i64, tpu.core_type = #tpu.core_type<tc>, window_params = [{transform_indices = @transform_0, window_bounds = array<i64: 1, 32, 128>}, {pipeline_mode = #tpu.pipeline_mode<synchronous>, transform_indices = @transform_1, window_bounds = array<i64: 32, 32>}, {pipeline_mode = #tpu.pipeline_mode<synchronous>, transform_indices = @transform_2, window_bounds = array<i64: 32, 1>}, {pipeline_mode = #tpu.pipeline_mode<synchronous>, transform_indices = @transform_3, window_bounds = array<i64: 32, 32>}, {pipeline_mode = #tpu.pipeline_mode<synchronous>, transform_indices = @transform_4, window_bounds = array<i64: 32, 1>}, {transform_indices = @transform_5, window_bounds = array<i64: 1, 32, 128>}]} {
    %c0 = arith.constant 0 : index
    %c0_0 = arith.constant 0 : index
    %0 = vector.load %arg3[%c0, %c0_0] : memref<32x32xf32, #tpu.memory_space<vmem>>, vector<32x32xf32>
    %c0_1 = arith.constant 0 : index
    %c0_2 = arith.constant 0 : index
    %c0_3 = arith.constant 0 : index
    %1 = vector.load %arg2[%c0_1, %c0_2, %c0_3] : memref<1x32x128xf32, #tpu.memory_space<vmem>>, vector<1x32x128xf32>
    %2 = vector.shape_cast %1 : vector<1x32x128xf32> to vector<32x128xf32>
    %cst = arith.constant dense<0.000000e+00> : vector<32x128xf32>
    %3 = tpu.matmul %0, %2, %cst {dimension_numbers = #tpu.dot_dimension_numbers<[1], [0], [0], [1], [0, 0, 1, 1], [], []>} : vector<32x32xf32>, vector<32x128xf32>, vector<32x128xf32> -> vector<32x128xf32>
    %c0_4 = arith.constant 0 : index
    %c0_5 = arith.constant 0 : index
    %4 = vector.load %arg4[%c0_4, %c0_5] : memref<32x1xf32, #tpu.memory_space<vmem>>, vector<32x1xf32>
    %5 = vector.broadcast %4 : vector<32x1xf32> to vector<32x128xf32>
    %6 = arith.addf %3, %5 : vector<32x128xf32>
    %cst_6 = arith.constant 0.000000e+00 : f32
    %7 = vector.broadcast %cst_6 : f32 to vector<32x128xf32>
    %8 = arith.maximumf %6, %7 : vector<32x128xf32>
    %c0_7 = arith.constant 0 : index
    %c0_8 = arith.constant 0 : index
    %9 = vector.load %arg5[%c0_7, %c0_8] : memref<32x32xf32, #tpu.memory_space<vmem>>, vector<32x32xf32>
    %cst_9 = arith.constant dense<0.000000e+00> : vector<32x128xf32>
    %10 = tpu.matmul %9, %8, %cst_9 {dimension_numbers = #tpu.dot_dimension_numbers<[1], [0], [0], [1], [0, 0, 1, 1], [], []>} : vector<32x32xf32>, vector<32x128xf32>, vector<32x128xf32> -> vector<32x128xf32>
    %c0_10 = arith.constant 0 : index
    %c0_11 = arith.constant 0 : index
    %11 = vector.load %arg6[%c0_10, %c0_11] : memref<32x1xf32, #tpu.memory_space<vmem>>, vector<32x1xf32>
    %12 = vector.broadcast %11 : vector<32x1xf32> to vector<32x128xf32>
    %13 = arith.addf %10, %12 : vector<32x128xf32>
    %14 = arith.truncf %13 : vector<32x128xf32> to vector<32x128xbf16>
    %c0_12 = arith.constant 0 : index
    %c0_13 = arith.constant 0 : index
    %c0_14 = arith.constant 0 : index
    %15 = vector.load %arg7[%c0_12, %c0_13, %c0_14] : memref<1x32x128xbf16, #tpu.memory_space<vmem>>, vector<1x32x128xbf16>
    %16 = vector.shape_cast %15 : vector<1x32x128xbf16> to vector<32x128xbf16>
    %17 = vector.shape_cast %14 : vector<32x128xbf16> to vector<1x32x128xbf16>
    tpu.vector_store %arg7[%c0_12, %c0_13, %c0_14], %17 {strides = array<i32>} : memref<1x32x128xbf16, #tpu.memory_space<vmem>>, vector<1x32x128xbf16>,
    return
  }
  func.func @transform_0(%arg0: i32, %arg1: i32) -> (i32, i32, i32) {
    %c0_i32 = arith.constant 0 : i32
    %c0_i32_0 = arith.constant 0 : i32
    return %arg0, %c0_i32, %arg1 : i32, i32, i32
  }
  func.func @transform_1(%arg0: i32, %arg1: i32) -> (i32, i32) {
    %c0_i32 = arith.constant 0 : i32
    %c0_i32_0 = arith.constant 0 : i32
    %c0_i32_1 = arith.constant 0 : i32
    return %c0_i32, %c0_i32_0 : i32, i32
  }
  func.func @transform_2(%arg0: i32, %arg1: i32) -> (i32, i32) {
    %c0_i32 = arith.constant 0 : i32
    %c0_i32_0 = arith.constant 0 : i32
    %c0_i32_1 = arith.constant 0 : i32
    return %c0_i32, %c0_i32_0 : i32, i32
  }
  func.func @transform_3(%arg0: i32, %arg1: i32) -> (i32, i32) {
    %c0_i32 = arith.constant 0 : i32
    %c0_i32_0 = arith.constant 0 : i32
    %c0_i32_1 = arith.constant 0 : i32
    return %c0_i32, %c0_i32_0 : i32, i32
  }
  func.func @transform_4(%arg0: i32, %arg1: i32) -> (i32, i32) {
    %c0_i32 = arith.constant 0 : i32
    %c0_i32_0 = arith.constant 0 : i32
    %c0_i32_1 = arith.constant 0 : i32
    return %c0_i32, %c0_i32_0 : i32, i32
  }
  func.func @transform_5(%arg0: i32, %arg1: i32) -> (i32, i32, i32) {
    %c0_i32 = arith.constant 0 : i32
    %c0_i32_0 = arith.constant 0 : i32
    return %arg0, %c0_i32, %arg1 : i32, i32, i32
  }
}

</mosaic_0001>

<bundles_post_ra>
// kernel: refinement_forward.1
= control target key start
LH: loop header
LB: loop body
LE: loop exit
PB: predicated region body
PF: predicated region fallthrough
CT: control target
= control target key end

     0   :  { %s931_s18 = smov 0   ;;  %s933_s19 = smov 0   ;;  %s1087_s0 = inlined_call_operand.vmem [shape: f32[2,32,200], index: 0, kind: input, shape index: {}]   ;;  %s1088_s1 = inlined_call_operand.vmem [shape: f32[32,32], index: 1, kind: input, shape index: {}]   ;;  %s1089_s2 = inlined_call_operand.vmem [shape: f32[32,1], index: 2, kind: input, shape index: {}]   ;;  %s1090_s3 = inlined_call_operand.vmem [shape: f32[32,32], index: 3, kind: input, shape index: {}]   ;;  %s1091_s4 = inlined_call_operand.vmem [shape: f32[32,1], index: 4, kind: input, shape index: {}]   ;;  %s1092_s5 = inlined_call_operand.vmem [shape: bf16[2,32,200], index: 5, kind: output, shape index: {}]  }
   0x1   :  { %s935_s20 = smov 0   ;;  %s937_s21 = smov 0  }
   0x2   :  { %s939_s22 = smov 0   ;;  %s941_s23 = smov 0  }
   0x3   :  { %s943_s24 = smov 0  }
   0x4 LB: > { %s24_s25 = sadd.s32 1, %s890_s22  ;;  %s27_s26 = sadd.s32 1, %s894_s23  ;;  %s898_s24 = sphi %s943_s24, %s15_s24   ;;  %s894_s23 = sphi %s941_s23, %s1099_s23   ;;  %s890_s22 = sphi %s939_s22, %s1098_s22   ;;  %s886_s21 = sphi %s937_s21, %s1097_s21   ;;  %s882_s20 = sphi %s935_s20, %s1096_s20   ;;  %s878_s19 = sphi %s933_s19, %s1095_s19   ;;  %s874_s18 = sphi %s931_s18, %s1094_s18  }
   0x5   : > { %p25_p0 = scmp.ge.s32.totalorder %s24_s25, 2  ;;  %s699_s27 = sadd.s32 4294967295, %s898_s24  }
   0x6   : > { %p43_p1 = scmp.ne.s32.totalorder %s878_s19, %s874_s18  ;;  %p44_p2 = scmp.eq.s32.totalorder %s898_s24, 0 }
   0x7   : > { %s1101_s25 = smov (%p25_p0, %s24_s25), 0  ;;  %s1103_s26 = smov (!%p25_p0, %s27_s26), %s894_s23 }
   0x8   : > { %p29_p3 = scmp.ge.s32.totalorder %s1103_s26, 2  ;;  %p159_p4 = scmp.eq.s32.totalorder %s699_s27, 3 }
   0x9   : > { %s32_s28 = ssub.s32 %s890_s22, %s1101_s25  ;;  %p45_p5 = por %p44_p2, %p43_p1 }
   0xa   : > { %s1105_s26 = smov (%p29_p3, %s1103_s26), 0  ;;  %p979_p6 = por %p159_p4, %p43_p1 }
   0xb   : > { %s31_s30 = ssub.s32 %s894_s23, %s1105_s26  ;;  %s36_s7 = sadd.s32 1, %s878_s19 }
   0xc   : > { %s33_s6 = sor.u32 %s32_s28, %s31_s30  ;;  %p702_p8 = scmp.ge.s32.totalorder %s898_s24, 4 }
   0xd   : > { %p34_p7 = scmp.eq.s32.totalorder %s33_s6, 0 }
   0xe   : > { %193 = sbr.rel (%p702_p8) target bundleno = 27 (0x1b), region = 32 }
   0xf   : > { %s987_s8 = scalar_select %p34_p7, %s878_s19, %s36_s7  }
  0x13   : > { %196 = sbr.rel (!%p45_p5) target bundleno = 27 (0x1b), region = 36  ;;  %s198_s9 = sand.u32 (%p45_p5), 1, %s878_s19  }
  0x14   : > { %s704_s10 = sshll.u32 (%p45_p5), %s894_s23, 3  ;;  %s703_s11 = sshll.u32 (%p45_p5), %s198_s9, 5 }
  0x15   : > { %s202_s12 = sadd.s32 (%p45_p5), %s890_s22, %s704_s10  ;;  %s200_s17 = scalar_lea.vmem (%p45_p5), [#allocation2], %s703_s11 }
  0x16   : > { %s705_s13 = sshll.u32 (%p45_p5), %s202_s12, 3 }
  0x17   : > { %s204_s16 = scalar_lea.vmem (%p45_p5), %s1087_s0, %s705_s13 }
  0x18   : > { %v239_v0 = vld [vmem:[%s204_s16] sm:$0xff]  ;;  %v241_v1 = vld [vmem:[%s204_s16 + $0x10] sm:$0xff] }
  0x19   : > { %v243_v2 = vld [vmem:[%s204_s16 + $0x20] sm:$0xff]  ;;  %240 = vst [vmem:[%s200_s17] sm:$0xff] %v239_v0  ;;  %242 = vst [vmem:[%s200_s17 + $0x8] sm:$0xff] %v241_v1  ;;  %v245_v3 = vld [vmem:[%s204_s16 + $0x30] sm:$0xff] }
  0x1a   : > { %244 = vst [vmem:[%s200_s17 + $0x10] sm:$0xff] %v243_v2  ;;  %246 = vst [vmem:[%s200_s17 + $0x18] sm:$0xff] %v245_v3 }
  0x1b PF: > { %p706_p9 = scmp.ge.s32.totalorder %s898_s24, 1  ;;  %p251_p10 = scmp.lt.s32.totalorder %s898_s24, 5 }
  0x1d   : > { %p252_p11 = pnand %p706_p9, %p251_p10 }
  0x1e   : > { %s258_s27 = sand.u32 (!%p252_p11), 1, %s874_s18  }
  0x1f   : > { %255 = sbr.rel (%p252_p11) target bundleno = 468 (0x1d4), region = 74  ;;  %s707_s6 = sshll.u32 (!%p252_p11), %s258_s27, 5 }
  0x20   : > { %s260_s12 = scalar_lea.vmem (!%p252_p11), [#allocation2], %s707_s6  ;;  %s708_s13 = sshll.u32 (!%p252_p11), %s258_s27, 4 }
  0x21   : > { %s283_s14 = scalar_lea.vmem (!%p252_p11), [#allocation3], %s708_s13 }
  0x24   : > { %v284_v4 = vld [vmem:[%s1088_s1] sm:$0xff]  ;;  %vm316_vm0 = vcmask 261120   ;;  %v900_v5 = vmov 0   ;;  %v295_v6 = vld [vmem:[%s1089_s2 + $0x18] sm:$0xff]  ;;  %v293_v7 = vld [vmem:[%s1089_s2 + $0x8] sm:$0xff]  ;;  %s722_s18 = sshll.u32 (%p979_p6), %s886_s21, 3 }
  0x25   : > { %765 = vmatprep.mubr.msk.f32.mxu0 %vm316_vm0, %v284_v4  ;;  %842 = vset.pattern.permute.xlu0 %v900_v5  ;;  %v291_v8 = vld [vmem:[%s260_s12 + $0x18] sm:$0xff]  ;;  %v290_v9 = vld [vmem:[%s260_s12 + $0x10] sm:$0xff]  ;;  %v292_v11 = vld [vmem:[%s1089_s2] sm:$0xff]  ;;  %s571_s27 = sadd.s32 (%p979_p6), %s882_s20, %s722_s18 }
  0x26   : > { %313 = vperm.xlu0 %842, %v295_v6   ;;  %843 = vset.pattern.permute.xlu1 %v900_v5  ;;  %v294_v10 = vld [vmem:[%s1089_s2 + $0x10] sm:$0xff]  ;;  %v289_v12 = vld [vmem:[%s260_s12 + $0x8] sm:$0xff]  ;;  %v288_v13 = vld [vmem:[%s260_s12] sm:$0xff]  ;;  %s723_s15 = sshll.u32 (%p979_p6), %s571_s27, 2 }
  0x27   : > { %303 = vperm.xlu1 %843, %v293_v7   ;;  %757 = vmatprep.subr.mxu0 %v291_v8  ;;  %v422_v14 = vld [vmem:[%s1091_s4] sm:$0xff]  ;;  %v423_v15 = vld [vmem:[%s1091_s4 + $0x8] sm:$0xff]  ;;  %v286_v17 = vld [vmem:[%s1088_s1 + $0x10] sm:$0xff]  ;;  %s573_s28 = scalar_lea.vmem (%p979_p6), %s1092_s5, %s723_s15 }
  0x28   : > { %758 = vmatpush3.msra.mxu0 %v291_v8  ;;  %v285_v16 = vld [vmem:[%s1088_s1 + $0x8] sm:$0xff]  ;;  %v424_v18 = vld [vmem:[%s1091_s4 + $0x10] sm:$0xff]  ;;  %v425_v19 = vld [vmem:[%s1091_s4 + $0x18] sm:$0xff] }
  0x29   : > { %759 = vmatprep.subr.mxu0 %v290_v9  ;;  %v287_v20 = vld [vmem:[%s1088_s1 + $0x18] sm:$0xff]  ;;  %v418_v21 = vld [vmem:[%s1090_s3] sm:$0xff]  ;;  %v419_v38 = vld [vmem:[%s1090_s3 + $0x8] sm:$0xff] }
  0x2a   : > { %308 = vperm.xlu0 %842, %v294_v10   ;;  %760 = vmatpush3.msra.mxu0 %v290_v9  ;;  %v420_v39 = vld [vmem:[%s1090_s3 + $0x10] sm:$0xff]  ;;  %v421_v40 = vld [vmem:[%s1090_s3 + $0x18] sm:$0xff] }
  0x2b   : > { %298 = vperm.xlu1 %843, %v292_v11   ;;  %761 = vmatprep.subr.mxu0 %v289_v12 }
  0x2c   : > { %762 = vmatpush3.msra.mxu0 %v289_v12  ;;  %779 = vmatprep.mubr.msk.f32.mxu1 %vm316_vm0, %v418_v21 }
  0x2d   : > { %763 = vmatprep.subr.mxu0 %v288_v13 }
  0x2e   : > { %428 = vperm.xlu0 %842, %v422_v14   ;;  %764 = vmatpush3.msra.mxu0 %v288_v13 }
  0x2f   : > { %433 = vperm.xlu1 %843, %v423_v15   ;;  %766 = vmatmul.mubr.msk.f32.vlgmr.msra.gmra.mxu0 %vm316_vm0, %v285_v16 }
  0x30   : > { %768 = vmatprep.mubr.msk.f32.mxu0 %vm316_vm0, %v286_v17 }
  0x32   : > { %438 = vperm.xlu0 %842, %v424_v18  }
  0x33   : > { %443 = vperm.xlu1 %843, %v425_v19   ;;  %769 = vmatmul.mubr.msk.f32.gmra.mxu0 %vm316_vm0, %v287_v20 }
  0xa1   : > { %v314_v22 = vpop.permute.xlu0 %313 }
  0xa2   : > { %v304_v24 = vpop.permute.xlu1 %303 }
  0xa5   : > { %v309_v28 = vpop.permute.xlu0 %308 }
  0xa6   : > { %v299_v33 = vpop.permute.xlu1 %298 }
  0xa9   : > { %v429_v41 = vpop.permute.xlu0 %428 }
  0xaa   : > { %v434_v42 = vpop.permute.xlu1 %433 }
  0xad   : > { %v439_v48 = vpop.permute.xlu0 %438 }
  0xae   : > { %v444_v50 = vpop.permute.xlu1 %443 }
  0xef   : > { %v767_v23 = vpop.f32.mrf.mxu0 }
  0xf0   : > { %v401_v30 = vadd.f32 %v767_v23, %v304_v24 }
  0xf1   : > { %v395_v25 = vpop.f32.mrf.mxu0 }
  0xf2   : > { %v396_v34 = vadd.f32 %v395_v25, %v299_v33  ;;  %v415_v36 = vmax.f32 %v401_v30, 0.0 }
  0xf3   : > { %v770_v26 = vpop.f32.mrf.mxu0 }
  0xf4   : > { %v411_v27 = vadd.f32 %v770_v26, %v314_v22  ;;  %v414_v37 = vmax.f32 %v396_v34, 0.0 }
  0xf5   : > { %v405_v29 = vpop.f32.mrf.mxu0 }
  0xf6   : > { %v417_v31 = vmax.f32 %v411_v27, 0.0  ;;  %v406_v32 = vadd.f32 %v405_v29, %v309_v28 }
  0xf8   : > { %v416_v35 = vmax.f32 %v406_v32, 0.0  ;;  %771 = vmatprep.subr.mxu1 %v417_v31 }
  0xf9   : > { %772 = vmatpush3.msra.mxu1 %v417_v31 }
  0xfa   : > { %773 = vmatprep.subr.mxu1 %v416_v35 }
  0xfb   : > { %774 = vmatpush3.msra.mxu1 %v416_v35 }
  0xfc   : > { %775 = vmatprep.subr.mxu1 %v415_v36 }
  0xfd   : > { %776 = vmatpush3.msra.mxu1 %v415_v36 }
  0xfe   : > { %777 = vmatprep.subr.mxu1 %v414_v37 }
  0xff   : > { %778 = vmatpush3.msra.mxu1 %v414_v37 }
 0x100   : > { %780 = vmatmul.mubr.msk.f32.vlgmr.msra.gmra.mxu1 %vm316_vm0, %v419_v38 }
 0x101   : > { %782 = vmatprep.mubr.msk.f32.mxu1 %vm316_vm0, %v420_v39 }
 0x104   : > { %783 = vmatmul.mubr.msk.f32.gmra.mxu1 %vm316_vm0, %v421_v40 }
 0x1c0   : > { %v781_v43 = vpop.f32.mrf.mxu1 }
 0x1c1   : > { %v530_v45 = vadd.f32 %v781_v43, %v434_v42 }
 0x1c2   : > { %v524_v44 = vpop.f32.mrf.mxu1 }
 0x1c3   : > { %v525_v46 = vadd.f32 %v524_v44, %v429_v41 }
 0x1c4   : > { %v784_v47 = vpop.f32.mrf.mxu1 }
 0x1c5   : > { %v733_v49 = vpack.c.bf16 %v530_v45, %v525_v46  ;;  %v540_v52 = vadd.f32 %v784_v47, %v444_v50 }
 0x1c6   : > { %v534_v51 = vpop.f32.mrf.mxu1 }
 0x1c7   : > { %734 = vst [vmem:[%s283_s14] sm:$0xff] %v733_v49   ;;  %v535_v53 = vadd.f32 %v534_v51, %v439_v48  ;;  %569 = sbr.rel (!%p979_p6) target bundleno = 468 (0x1d4), region = 82 }
 0x1c9   : > { %v738_v54 = vpack.c.bf16 %v540_v52, %v535_v53 }
 0x1cb   : > { %740 = vst [vmem:[%s283_s14 + $0x8] sm:$0xff] %v738_v54  }
 0x1ce   : > { %v590_v55 = vld [vmem:[%s283_s14] sm:$0xf]  ;;  %v592_v56 = vld [vmem:[%s283_s14 + $0x4] sm:$0xf] }
 0x1cf   : > { %591 = vst [vmem:[%s573_s28] sm:$0xf] %v590_v55  ;;  %593 = vst [vmem:[%s573_s28 + $0x8] sm:$0xf] %v592_v56 }
 0x1d2   : > { %v594_v57 = vld [vmem:[%s283_s14 + $0x8] sm:$0xf]  ;;  %v596_v58 = vld [vmem:[%s283_s14 + $0xc] sm:$0xf] }
 0x1d3   : > { %595 = vst [vmem:[%s573_s28 + $0x10] sm:$0xf] %v594_v57  ;;  %597 = vst [vmem:[%s573_s28 + $0x18] sm:$0xf] %v596_v58 }
 0x1d4 PF: > { %s15_s24 = sadd.s32 1, %s898_s24   ;;  %s1094_s18 = smov %s878_s19 }
 0x1d5   : > { %p12_p12 = scmp.ge.s32.totalorder %s15_s24, 6   ;;  %s1095_s19 = smov %s987_s8 }
 0x1d6   : > { %s1096_s20 = smov %s890_s22  ;;  %s1097_s21 = smov %s894_s23 }
 0x1d7   : > { %s1098_s22 = smov %s1101_s25  ;;  %s1099_s23 = smov %s1105_s26 }
 0x1d8   :  { %14 = sbr.rel (!%p12_p12) target bundleno = 4 (0x4), region = 154 }

</bundles_post_ra>
